<compile_context>
chip_gen: v5e
topology: v5e:2x2
jax: 0.10.0
libtpu: 0.0.40
codegen_flags: <defaults>
</compile_context>

<pallas_src>
import jax
import jax.numpy as jnp
from jax import lax
from jax.experimental import pallas as pl
from jax.experimental.pallas import tpu as pltpu


# --------------------------- fused MHA kernel --------------------------------
def _fused_mha_kernel(x_ref, bias_ref, w_qkv_ref, b_qkv_ref, w_out_ref, b_out_ref,
                      o_ref, heads_ref):
    # x_ref     : (B*L, C)      all batch elements, lane-dense features
    # bias_ref  : (B, N, L, L)  additive attention bias
    # w_qkv_ref : (C, 3C),  b_qkv_ref : (1, 3C)
    # w_out_ref : (C, C),   b_out_ref : (1, C)
    # o_ref     : (B*L, C)      output (post output-projection)
    # heads_ref : (B*L, C)      VMEM scratch: attention outputs, heads contiguous in lanes
    BL, C = x_ref.shape
    B, N, L, _ = bias_ref.shape
    D = C // N
    scale = 1.0 / jnp.sqrt(jnp.float32(D))

    # ---- QKV projection for the whole batch in one MXU dot (f32 accumulate) -----
    qkv = jnp.dot(x_ref[...], w_qkv_ref[...],
                  preferred_element_type=jnp.float32) + b_qkv_ref[...]   # (B*L, 3C)

    # ---- attention, statically unrolled over (batch, head): B*N = 8 tiny tiles --
    for b in range(B):
        r0 = b * L
        for h in range(N):
            # Fold the softmax scale into q: L*D multiplies instead of L*L.
            q = qkv[r0:r0 + L, h * D:(h + 1) * D] * scale                 # (L, D)
            k = qkv[r0:r0 + L, C + h * D:C + (h + 1) * D]                 # (L, D)
            v = qkv[r0:r0 + L, 2 * C + h * D:2 * C + (h + 1) * D]         # (L, D)

            # Contract the last dims of q and k directly -- no materialized k.T.
            s = lax.dot_general(q, k, (((1,), (1,)), ((), ())),
                                preferred_element_type=jnp.float32)       # (L, L)
            s = s + bias_ref[b, h]

            m = jnp.max(s, axis=-1, keepdims=True)
            p = jnp.exp(s - m)
            denom = jnp.sum(p, axis=-1, keepdims=True)                    # (L, 1)
            # Exact normalization: denominator is only (L,1) applied to (L,D).
            o_h = jnp.dot(p, v, preferred_element_type=jnp.float32) / denom

            # "concat(heads)": write into the lane-contiguous scratch buffer.
            heads_ref[r0:r0 + L, h * D:(h + 1) * D] = o_h

    # ---- single output projection for all batch rows / heads (one MXU dot) ------
    out = jnp.dot(heads_ref[...], w_out_ref[...],
                  preferred_element_type=jnp.float32) + b_out_ref[...]
    # nn.Dropout in eval mode is identity.
    o_ref[...] = out


# ------------------------------- forward -------------------------------------
def multihead_attention_forward(x, bias, params, n_heads):
    B, L, C = x.shape
    assert C % n_heads == 0

    w_qkv = params["w_qkv"]                         # (C, 3C)
    b_qkv = params["b_qkv"].reshape(1, 3 * C)       # (1, 3C)
    w_out = params["w_out"]                         # (C, C)
    b_out = params["b_out"].reshape(1, C)           # (1, C)

    vmem = pl.BlockSpec(memory_space=pltpu.MemorySpace.VMEM)   # whole array in VMEM
    out = pl.pallas_call(
        _fused_mha_kernel,
        out_shape=jax.ShapeDtypeStruct((B * L, C), jnp.float32),
        in_specs=[vmem] * 6,
        out_specs=vmem,
        scratch_shapes=[pltpu.VMEM((B * L, C), jnp.float32)],
    )(x.reshape(B * L, C), bias.astype(x.dtype), w_qkv, b_qkv, w_out, b_out)
    return out.reshape(B, L, C)                     # free row-major reshape in XLA


# ------------------------------ reference ------------------------------------
def reference_forward(x, bias, params, n_heads):
    B, L, d_model = x.shape
    D = d_model // n_heads
    qkv = x @ params["w_qkv"] + params["b_qkv"]
    q, k, v = jnp.split(qkv, 3, axis=-1)
    q, k, v = [t.reshape(B, L, n_heads, D).transpose(0, 2, 1, 3) for t in (q, k, v)]
    s = jnp.einsum("bnld,bnmd->bnlm", q, k) / jnp.sqrt(jnp.float32(D)) + bias
    p = jax.nn.softmax(s, axis=-1)
    o = jnp.einsum("bnlm,bnmd->bnld", p, v)
    o = o.transpose(0, 2, 1, 3).reshape(B, L, d_model)
    return o @ params["w_out"] + params["b_out"]


# -------------------------------- main ----------------------------------------
if __name__ == "__main__":
    B, L, n_heads, d_model = 2, 8, 4, 32  # d_head = 8

    key = jax.random.PRNGKey(0)
    k0, k1, k2, k3, k4, k5 = jax.random.split(key, 6)

    x = jax.random.normal(k0, (B, L, d_model), jnp.float32)
    bias = 0.1 * jax.random.normal(k1, (B, n_heads, L, L), jnp.float32)

    # Deterministic synthetic parameters (qkv_bias=True).
    params = {
        "w_qkv": 0.05 * jax.random.normal(k2, (d_model, 3 * d_model), jnp.float32),
        "b_qkv": 0.02 * jax.random.normal(k3, (3 * d_model,), jnp.float32),
        "w_out": 0.05 * jax.random.normal(k4, (d_model, d_model), jnp.float32),
        "b_out": 0.02 * jax.random.normal(k5, (d_model,), jnp.float32),
    }

    out = multihead_attention_forward(x, bias, params, n_heads)
    out = jax.block_until_ready(out)

    ref = reference_forward(x, bias, params, n_heads)
    assert out.shape == (B, L, d_model)
    # Exact softmax normalization restored -> tight f32 tolerance again.
    assert jnp.allclose(out, ref, atol=1e-4, rtol=1e-4), "mismatch vs reference"

    print("KERNEL_OK")
</pallas_src>

<mosaic_0001>
module attributes {stable_mosaic.version = 11 : i64} {
  func.func @_fused_mha_kernel(%arg0: memref<16x32xf32, #tpu.memory_space<vmem>>, %arg1: memref<2x4x8x8xf32, #tpu.memory_space<vmem>>, %arg2: memref<32x96xf32, #tpu.memory_space<vmem>>, %arg3: memref<1x96xf32, #tpu.memory_space<vmem>>, %arg4: memref<32x32xf32, #tpu.memory_space<vmem>>, %arg5: memref<1x32xf32, #tpu.memory_space<vmem>>, %arg6: memref<16x32xf32, #tpu.memory_space<vmem>>, %arg7: memref<16x32xf32, #tpu.memory_space<vmem>>) attributes {dimension_semantics = [], scalar_prefetch = 0 : i64, scratch_operands = 1 : i64, tpu.core_type = #tpu.core_type<tc>} {
    %cst = arith.constant 8.000000e+00 : f32
    %0 = math.sqrt %cst : f32
    %cst_0 = arith.constant 1.000000e+00 : f32
    %1 = arith.divf %cst_0, %0 : f32
    %c0 = arith.constant 0 : index
    %c0_1 = arith.constant 0 : index
    %2 = vector.load %arg0[%c0, %c0_1] : memref<16x32xf32, #tpu.memory_space<vmem>>, vector<16x32xf32>
    %c0_2 = arith.constant 0 : index
    %c0_3 = arith.constant 0 : index
    %3 = vector.load %arg2[%c0_2, %c0_3] : memref<32x96xf32, #tpu.memory_space<vmem>>, vector<32x96xf32>
    %cst_4 = arith.constant dense<0.000000e+00> : vector<16x96xf32>
    %4 = tpu.matmul %2, %3, %cst_4 {dimension_numbers = #tpu.dot_dimension_numbers<[1], [0], [0], [1], [0, 0, 1, 1], [], []>} : vector<16x32xf32>, vector<32x96xf32>, vector<16x96xf32> -> vector<16x96xf32>
    %c0_5 = arith.constant 0 : index
    %c0_6 = arith.constant 0 : index
    %5 = vector.load %arg3[%c0_5, %c0_6] : memref<1x96xf32, #tpu.memory_space<vmem>>, vector<1x96xf32>
    %6 = vector.broadcast %5 : vector<1x96xf32> to vector<16x96xf32>
    %7 = arith.addf %4, %6 : vector<16x96xf32>
    %8 = vector.extract_strided_slice %7 {offsets = [0, 0], sizes = [8, 8], strides = [1, 1]} : vector<16x96xf32> to vector<8x8xf32>
    %9 = vector.broadcast %1 : f32 to vector<8x8xf32>
    %10 = arith.mulf %8, %9 : vector<8x8xf32>
    %11 = vector.extract_strided_slice %7 {offsets = [0, 32], sizes = [8, 8], strides = [1, 1]} : vector<16x96xf32> to vector<8x8xf32>
    %12 = vector.extract_strided_slice %7 {offsets = [0, 64], sizes = [8, 8], strides = [1, 1]} : vector<16x96xf32> to vector<8x8xf32>
    %cst_7 = arith.constant dense<0.000000e+00> : vector<8x8xf32>
    %13 = tpu.matmul %10, %11, %cst_7 {dimension_numbers = #tpu.dot_dimension_numbers<[1], [1], [0], [0], [0, 0, 1, 0], [], []>} : vector<8x8xf32>, vector<8x8xf32>, vector<8x8xf32> -> vector<8x8xf32>
    %c0_8 = arith.constant 0 : index
    %c0_9 = arith.constant 0 : index
    %c0_10 = arith.constant 0 : index
    %c0_11 = arith.constant 0 : index
    %14 = vector.load %arg1[%c0_8, %c0_9, %c0_10, %c0_11] : memref<2x4x8x8xf32, #tpu.memory_space<vmem>>, vector<1x1x8x8xf32>
    %15 = vector.shape_cast %14 : vector<1x1x8x8xf32> to vector<8x8xf32>
    %16 = arith.addf %13, %15 : vector<8x8xf32>
    %cst_12 = arith.constant dense<0xFF800000> : vector<8xf32>
    %17 = vector.multi_reduction <maximumf>, %16, %cst_12 [1] : vector<8x8xf32> to vector<8xf32>
    %18 = vector.shape_cast %17 : vector<8xf32> to vector<8x1xf32>
    %19 = vector.broadcast %18 : vector<8x1xf32> to vector<8x8xf32>
    %20 = arith.subf %16, %19 : vector<8x8xf32>
    %21 = math.exp %20 : vector<8x8xf32>
    %cst_13 = arith.constant dense<0.000000e+00> : vector<8xf32>
    %22 = vector.multi_reduction <add>, %21, %cst_13 [1] : vector<8x8xf32> to vector<8xf32>
    %23 = vector.shape_cast %22 : vector<8xf32> to vector<8x1xf32>
    %cst_14 = arith.constant dense<0.000000e+00> : vector<8x8xf32>
    %24 = tpu.matmul %21, %12, %cst_14 {dimension_numbers = #tpu.dot_dimension_numbers<[1], [0], [0], [1], [0, 0, 1, 1], [], []>} : vector<8x8xf32>, vector<8x8xf32>, vector<8x8xf32> -> vector<8x8xf32>
    %25 = vector.broadcast %23 : vector<8x1xf32> to vector<8x8xf32>
    %26 = arith.divf %24, %25 : vector<8x8xf32>
    %c0_15 = arith.constant 0 : index
    %c0_16 = arith.constant 0 : index
    %27 = vector.load %arg7[%c0_15, %c0_16] : memref<16x32xf32, #tpu.memory_space<vmem>>, vector<8x8xf32>
    tpu.vector_store %arg7[%c0_15, %c0_16], %26 {strides = array<i32>} : memref<16x32xf32, #tpu.memory_space<vmem>>, vector<8x8xf32>,
    %28 = vector.extract_strided_slice %7 {offsets = [0, 8], sizes = [8, 8], strides = [1, 1]} : vector<16x96xf32> to vector<8x8xf32>
    %29 = vector.broadcast %1 : f32 to vector<8x8xf32>
    %30 = arith.mulf %28, %29 : vector<8x8xf32>
    %31 = vector.extract_strided_slice %7 {offsets = [0, 40], sizes = [8, 8], strides = [1, 1]} : vector<16x96xf32> to vector<8x8xf32>
    %32 = vector.extract_strided_slice %7 {offsets = [0, 72], sizes = [8, 8], strides = [1, 1]} : vector<16x96xf32> to vector<8x8xf32>
    %cst_17 = arith.constant dense<0.000000e+00> : vector<8x8xf32>
    %33 = tpu.matmul %30, %31, %cst_17 {dimension_numbers = #tpu.dot_dimension_numbers<[1], [1], [0], [0], [0, 0, 1, 0], [], []>} : vector<8x8xf32>, vector<8x8xf32>, vector<8x8xf32> -> vector<8x8xf32>
    %c0_18 = arith.constant 0 : index
    %c1 = arith.constant 1 : index
    %c0_19 = arith.constant 0 : index
    %c0_20 = arith.constant 0 : index
    %34 = vector.load %arg1[%c0_18, %c1, %c0_19, %c0_20] : memref<2x4x8x8xf32, #tpu.memory_space<vmem>>, vector<1x1x8x8xf32>
    %35 = vector.shape_cast %34 : vector<1x1x8x8xf32> to vector<8x8xf32>
    %36 = arith.addf %33, %35 : vector<8x8xf32>
    %cst_21 = arith.constant dense<0xFF800000> : vector<8xf32>
    %37 = vector.multi_reduction <maximumf>, %36, %cst_21 [1] : vector<8x8xf32> to vector<8xf32>
    %38 = vector.shape_cast %37 : vector<8xf32> to vector<8x1xf32>
    %39 = vector.broadcast %38 : vector<8x1xf32> to vector<8x8xf32>
    %40 = arith.subf %36, %39 : vector<8x8xf32>
    %41 = math.exp %40 : vector<8x8xf32>
    %cst_22 = arith.constant dense<0.000000e+00> : vector<8xf32>
    %42 = vector.multi_reduction <add>, %41, %cst_22 [1] : vector<8x8xf32> to vector<8xf32>
    %43 = vector.shape_cast %42 : vector<8xf32> to vector<8x1xf32>
    %cst_23 = arith.constant dense<0.000000e+00> : vector<8x8xf32>
    %44 = tpu.matmul %41, %32, %cst_23 {dimension_numbers = #tpu.dot_dimension_numbers<[1], [0], [0], [1], [0, 0, 1, 1], [], []>} : vector<8x8xf32>, vector<8x8xf32>, vector<8x8xf32> -> vector<8x8xf32>
    %45 = vector.broadcast %43 : vector<8x1xf32> to vector<8x8xf32>
    %46 = arith.divf %44, %45 : vector<8x8xf32>
    %c0_24 = arith.constant 0 : index
    %c8 = arith.constant 8 : index
    %47 = vector.load %arg7[%c0_24, %c8] : memref<16x32xf32, #tpu.memory_space<vmem>>, vector<8x8xf32>
    tpu.vector_store %arg7[%c0_24, %c8], %46 {strides = array<i32>} : memref<16x32xf32, #tpu.memory_space<vmem>>, vector<8x8xf32>,
    %48 = vector.extract_strided_slice %7 {offsets = [0, 16], sizes = [8, 8], strides = [1, 1]} : vector<16x96xf32> to vector<8x8xf32>
    %49 = vector.broadcast %1 : f32 to vector<8x8xf32>
    %50 = arith.mulf %48, %49 : vector<8x8xf32>
    %51 = vector.extract_strided_slice %7 {offsets = [0, 48], sizes = [8, 8], strides = [1, 1]} : vector<16x96xf32> to vector<8x8xf32>
    %52 = vector.extract_strided_slice %7 {offsets = [0, 80], sizes = [8, 8], strides = [1, 1]} : vector<16x96xf32> to vector<8x8xf32>
    %cst_25 = arith.constant dense<0.000000e+00> : vector<8x8xf32>
    %53 = tpu.matmul %50, %51, %cst_25 {dimension_numbers = #tpu.dot_dimension_numbers<[1], [1], [0], [0], [0, 0, 1, 0], [], []>} : vector<8x8xf32>, vector<8x8xf32>, vector<8x8xf32> -> vector<8x8xf32>
    %c0_26 = arith.constant 0 : index
    %c2 = arith.constant 2 : index
    %c0_27 = arith.constant 0 : index
    %c0_28 = arith.constant 0 : index
    %54 = vector.load %arg1[%c0_26, %c2, %c0_27, %c0_28] : memref<2x4x8x8xf32, #tpu.memory_space<vmem>>, vector<1x1x8x8xf32>
    %55 = vector.shape_cast %54 : vector<1x1x8x8xf32> to vector<8x8xf32>
    %56 = arith.addf %53, %55 : vector<8x8xf32>
    %cst_29 = arith.constant dense<0xFF800000> : vector<8xf32>
    %57 = vector.multi_reduction <maximumf>, %56, %cst_29 [1] : vector<8x8xf32> to vector<8xf32>
    %58 = vector.shape_cast %57 : vector<8xf32> to vector<8x1xf32>
    %59 = vector.broadcast %58 : vector<8x1xf32> to vector<8x8xf32>
    %60 = arith.subf %56, %59 : vector<8x8xf32>
    %61 = math.exp %60 : vector<8x8xf32>
    %cst_30 = arith.constant dense<0.000000e+00> : vector<8xf32>
    %62 = vector.multi_reduction <add>, %61, %cst_30 [1] : vector<8x8xf32> to vector<8xf32>
    %63 = vector.shape_cast %62 : vector<8xf32> to vector<8x1xf32>
    %cst_31 = arith.constant dense<0.000000e+00> : vector<8x8xf32>
    %64 = tpu.matmul %61, %52, %cst_31 {dimension_numbers = #tpu.dot_dimension_numbers<[1], [0], [0], [1], [0, 0, 1, 1], [], []>} : vector<8x8xf32>, vector<8x8xf32>, vector<8x8xf32> -> vector<8x8xf32>
    %65 = vector.broadcast %63 : vector<8x1xf32> to vector<8x8xf32>
    %66 = arith.divf %64, %65 : vector<8x8xf32>
    %c0_32 = arith.constant 0 : index
    %c16 = arith.constant 16 : index
    %67 = vector.load %arg7[%c0_32, %c16] : memref<16x32xf32, #tpu.memory_space<vmem>>, vector<8x8xf32>
    tpu.vector_store %arg7[%c0_32, %c16], %66 {strides = array<i32>} : memref<16x32xf32, #tpu.memory_space<vmem>>, vector<8x8xf32>,
    %68 = vector.extract_strided_slice %7 {offsets = [0, 24], sizes = [8, 8], strides = [1, 1]} : vector<16x96xf32> to vector<8x8xf32>
    %69 = vector.broadcast %1 : f32 to vector<8x8xf32>
    %70 = arith.mulf %68, %69 : vector<8x8xf32>
    %71 = vector.extract_strided_slice %7 {offsets = [0, 56], sizes = [8, 8], strides = [1, 1]} : vector<16x96xf32> to vector<8x8xf32>
    %72 = vector.extract_strided_slice %7 {offsets = [0, 88], sizes = [8, 8], strides = [1, 1]} : vector<16x96xf32> to vector<8x8xf32>
    %cst_33 = arith.constant dense<0.000000e+00> : vector<8x8xf32>
    %73 = tpu.matmul %70, %71, %cst_33 {dimension_numbers = #tpu.dot_dimension_numbers<[1], [1], [0], [0], [0, 0, 1, 0], [], []>} : vector<8x8xf32>, vector<8x8xf32>, vector<8x8xf32> -> vector<8x8xf32>
    %c0_34 = arith.constant 0 : index
    %c3 = arith.constant 3 : index
    %c0_35 = arith.constant 0 : index
    %c0_36 = arith.constant 0 : index
    %74 = vector.load %arg1[%c0_34, %c3, %c0_35, %c0_36] : memref<2x4x8x8xf32, #tpu.memory_space<vmem>>, vector<1x1x8x8xf32>
    %75 = vector.shape_cast %74 : vector<1x1x8x8xf32> to vector<8x8xf32>
    %76 = arith.addf %73, %75 : vector<8x8xf32>
    %cst_37 = arith.constant dense<0xFF800000> : vector<8xf32>
    %77 = vector.multi_reduction <maximumf>, %76, %cst_37 [1] : vector<8x8xf32> to vector<8xf32>
    %78 = vector.shape_cast %77 : vector<8xf32> to vector<8x1xf32>
    %79 = vector.broadcast %78 : vector<8x1xf32> to vector<8x8xf32>
    %80 = arith.subf %76, %79 : vector<8x8xf32>
    %81 = math.exp %80 : vector<8x8xf32>
    %cst_38 = arith.constant dense<0.000000e+00> : vector<8xf32>
    %82 = vector.multi_reduction <add>, %81, %cst_38 [1] : vector<8x8xf32> to vector<8xf32>
    %83 = vector.shape_cast %82 : vector<8xf32> to vector<8x1xf32>
    %cst_39 = arith.constant dense<0.000000e+00> : vector<8x8xf32>
    %84 = tpu.matmul %81, %72, %cst_39 {dimension_numbers = #tpu.dot_dimension_numbers<[1], [0], [0], [1], [0, 0, 1, 1], [], []>} : vector<8x8xf32>, vector<8x8xf32>, vector<8x8xf32> -> vector<8x8xf32>
    %85 = vector.broadcast %83 : vector<8x1xf32> to vector<8x8xf32>
    %86 = arith.divf %84, %85 : vector<8x8xf32>
    %c0_40 = arith.constant 0 : index
    %c24 = arith.constant 24 : index
    %87 = vector.load %arg7[%c0_40, %c24] : memref<16x32xf32, #tpu.memory_space<vmem>>, vector<8x8xf32>
    tpu.vector_store %arg7[%c0_40, %c24], %86 {strides = array<i32>} : memref<16x32xf32, #tpu.memory_space<vmem>>, vector<8x8xf32>,
    %88 = vector.extract_strided_slice %7 {offsets = [8, 0], sizes = [8, 8], strides = [1, 1]} : vector<16x96xf32> to vector<8x8xf32>
    %89 = vector.broadcast %1 : f32 to vector<8x8xf32>
    %90 = arith.mulf %88, %89 : vector<8x8xf32>
    %91 = vector.extract_strided_slice %7 {offsets = [8, 32], sizes = [8, 8], strides = [1, 1]} : vector<16x96xf32> to vector<8x8xf32>
    %92 = vector.extract_strided_slice %7 {offsets = [8, 64], sizes = [8, 8], strides = [1, 1]} : vector<16x96xf32> to vector<8x8xf32>
    %cst_41 = arith.constant dense<0.000000e+00> : vector<8x8xf32>
    %93 = tpu.matmul %90, %91, %cst_41 {dimension_numbers = #tpu.dot_dimension_numbers<[1], [1], [0], [0], [0, 0, 1, 0], [], []>} : vector<8x8xf32>, vector<8x8xf32>, vector<8x8xf32> -> vector<8x8xf32>
    %c1_42 = arith.constant 1 : index
    %c0_43 = arith.constant 0 : index
    %c0_44 = arith.constant 0 : index
    %c0_45 = arith.constant 0 : index
    %94 = vector.load %arg1[%c1_42, %c0_43, %c0_44, %c0_45] : memref<2x4x8x8xf32, #tpu.memory_space<vmem>>, vector<1x1x8x8xf32>
    %95 = vector.shape_cast %94 : vector<1x1x8x8xf32> to vector<8x8xf32>
    %96 = arith.addf %93, %95 : vector<8x8xf32>
    %cst_46 = arith.constant dense<0xFF800000> : vector<8xf32>
    %97 = vector.multi_reduction <maximumf>, %96, %cst_46 [1] : vector<8x8xf32> to vector<8xf32>
    %98 = vector.shape_cast %97 : vector<8xf32> to vector<8x1xf32>
    %99 = vector.broadcast %98 : vector<8x1xf32> to vector<8x8xf32>
    %100 = arith.subf %96, %99 : vector<8x8xf32>
    %101 = math.exp %100 : vector<8x8xf32>
    %cst_47 = arith.constant dense<0.000000e+00> : vector<8xf32>
    %102 = vector.multi_reduction <add>, %101, %cst_47 [1] : vector<8x8xf32> to vector<8xf32>
    %103 = vector.shape_cast %102 : vector<8xf32> to vector<8x1xf32>
    %cst_48 = arith.constant dense<0.000000e+00> : vector<8x8xf32>
    %104 = tpu.matmul %101, %92, %cst_48 {dimension_numbers = #tpu.dot_dimension_numbers<[1], [0], [0], [1], [0, 0, 1, 1], [], []>} : vector<8x8xf32>, vector<8x8xf32>, vector<8x8xf32> -> vector<8x8xf32>
    %105 = vector.broadcast %103 : vector<8x1xf32> to vector<8x8xf32>
    %106 = arith.divf %104, %105 : vector<8x8xf32>
    %c8_49 = arith.constant 8 : index
    %c0_50 = arith.constant 0 : index
    %107 = vector.load %arg7[%c8_49, %c0_50] : memref<16x32xf32, #tpu.memory_space<vmem>>, vector<8x8xf32>
    tpu.vector_store %arg7[%c8_49, %c0_50], %106 {strides = array<i32>} : memref<16x32xf32, #tpu.memory_space<vmem>>, vector<8x8xf32>,
    %108 = vector.extract_strided_slice %7 {offsets = [8, 8], sizes = [8, 8], strides = [1, 1]} : vector<16x96xf32> to vector<8x8xf32>
    %109 = vector.broadcast %1 : f32 to vector<8x8xf32>
    %110 = arith.mulf %108, %109 : vector<8x8xf32>
    %111 = vector.extract_strided_slice %7 {offsets = [8, 40], sizes = [8, 8], strides = [1, 1]} : vector<16x96xf32> to vector<8x8xf32>
    %112 = vector.extract_strided_slice %7 {offsets = [8, 72], sizes = [8, 8], strides = [1, 1]} : vector<16x96xf32> to vector<8x8xf32>
    %cst_51 = arith.constant dense<0.000000e+00> : vector<8x8xf32>
    %113 = tpu.matmul %110, %111, %cst_51 {dimension_numbers = #tpu.dot_dimension_numbers<[1], [1], [0], [0], [0, 0, 1, 0], [], []>} : vector<8x8xf32>, vector<8x8xf32>, vector<8x8xf32> -> vector<8x8xf32>
    %c1_52 = arith.constant 1 : index
    %c1_53 = arith.constant 1 : index
    %c0_54 = arith.constant 0 : index
    %c0_55 = arith.constant 0 : index
    %114 = vector.load %arg1[%c1_52, %c1_53, %c0_54, %c0_55] : memref<2x4x8x8xf32, #tpu.memory_space<vmem>>, vector<1x1x8x8xf32>
    %115 = vector.shape_cast %114 : vector<1x1x8x8xf32> to vector<8x8xf32>
    %116 = arith.addf %113, %115 : vector<8x8xf32>
    %cst_56 = arith.constant dense<0xFF800000> : vector<8xf32>
    %117 = vector.multi_reduction <maximumf>, %116, %cst_56 [1] : vector<8x8xf32> to vector<8xf32>
    %118 = vector.shape_cast %117 : vector<8xf32> to vector<8x1xf32>
    %119 = vector.broadcast %118 : vector<8x1xf32> to vector<8x8xf32>
    %120 = arith.subf %116, %119 : vector<8x8xf32>
    %121 = math.exp %120 : vector<8x8xf32>
    %cst_57 = arith.constant dense<0.000000e+00> : vector<8xf32>
    %122 = vector.multi_reduction <add>, %121, %cst_57 [1] : vector<8x8xf32> to vector<8xf32>
    %123 = vector.shape_cast %122 : vector<8xf32> to vector<8x1xf32>
    %cst_58 = arith.constant dense<0.000000e+00> : vector<8x8xf32>
    %124 = tpu.matmul %121, %112, %cst_58 {dimension_numbers = #tpu.dot_dimension_numbers<[1], [0], [0], [1], [0, 0, 1, 1], [], []>} : vector<8x8xf32>, vector<8x8xf32>, vector<8x8xf32> -> vector<8x8xf32>
    %125 = vector.broadcast %123 : vector<8x1xf32> to vector<8x8xf32>
    %126 = arith.divf %124, %125 : vector<8x8xf32>
    %c8_59 = arith.constant 8 : index
    %c8_60 = arith.constant 8 : index
    %127 = vector.load %arg7[%c8_59, %c8_60] : memref<16x32xf32, #tpu.memory_space<vmem>>, vector<8x8xf32>
    tpu.vector_store %arg7[%c8_59, %c8_60], %126 {strides = array<i32>} : memref<16x32xf32, #tpu.memory_space<vmem>>, vector<8x8xf32>,
    %128 = vector.extract_strided_slice %7 {offsets = [8, 16], sizes = [8, 8], strides = [1, 1]} : vector<16x96xf32> to vector<8x8xf32>
    %129 = vector.broadcast %1 : f32 to vector<8x8xf32>
    %130 = arith.mulf %128, %129 : vector<8x8xf32>
    %131 = vector.extract_strided_slice %7 {offsets = [8, 48], sizes = [8, 8], strides = [1, 1]} : vector<16x96xf32> to vector<8x8xf32>
    %132 = vector.extract_strided_slice %7 {offsets = [8, 80], sizes = [8, 8], strides = [1, 1]} : vector<16x96xf32> to vector<8x8xf32>
    %cst_61 = arith.constant dense<0.000000e+00> : vector<8x8xf32>
    %133 = tpu.matmul %130, %131, %cst_61 {dimension_numbers = #tpu.dot_dimension_numbers<[1], [1], [0], [0], [0, 0, 1, 0], [], []>} : vector<8x8xf32>, vector<8x8xf32>, vector<8x8xf32> -> vector<8x8xf32>
    %c1_62 = arith.constant 1 : index
    %c2_63 = arith.constant 2 : index
    %c0_64 = arith.constant 0 : index
    %c0_65 = arith.constant 0 : index
    %134 = vector.load %arg1[%c1_62, %c2_63, %c0_64, %c0_65] : memref<2x4x8x8xf32, #tpu.memory_space<vmem>>, vector<1x1x8x8xf32>
    %135 = vector.shape_cast %134 : vector<1x1x8x8xf32> to vector<8x8xf32>
    %136 = arith.addf %133, %135 : vector<8x8xf32>
    %cst_66 = arith.constant dense<0xFF800000> : vector<8xf32>
    %137 = vector.multi_reduction <maximumf>, %136, %cst_66 [1] : vector<8x8xf32> to vector<8xf32>
    %138 = vector.shape_cast %137 : vector<8xf32> to vector<8x1xf32>
    %139 = vector.broadcast %138 : vector<8x1xf32> to vector<8x8xf32>
    %140 = arith.subf %136, %139 : vector<8x8xf32>
    %141 = math.exp %140 : vector<8x8xf32>
    %cst_67 = arith.constant dense<0.000000e+00> : vector<8xf32>
    %142 = vector.multi_reduction <add>, %141, %cst_67 [1] : vector<8x8xf32> to vector<8xf32>
    %143 = vector.shape_cast %142 : vector<8xf32> to vector<8x1xf32>
    %cst_68 = arith.constant dense<0.000000e+00> : vector<8x8xf32>
    %144 = tpu.matmul %141, %132, %cst_68 {dimension_numbers = #tpu.dot_dimension_numbers<[1], [0], [0], [1], [0, 0, 1, 1], [], []>} : vector<8x8xf32>, vector<8x8xf32>, vector<8x8xf32> -> vector<8x8xf32>
    %145 = vector.broadcast %143 : vector<8x1xf32> to vector<8x8xf32>
    %146 = arith.divf %144, %145 : vector<8x8xf32>
    %c8_69 = arith.constant 8 : index
    %c16_70 = arith.constant 16 : index
    %147 = vector.load %arg7[%c8_69, %c16_70] : memref<16x32xf32, #tpu.memory_space<vmem>>, vector<8x8xf32>
    tpu.vector_store %arg7[%c8_69, %c16_70], %146 {strides = array<i32>} : memref<16x32xf32, #tpu.memory_space<vmem>>, vector<8x8xf32>,
    %148 = vector.extract_strided_slice %7 {offsets = [8, 24], sizes = [8, 8], strides = [1, 1]} : vector<16x96xf32> to vector<8x8xf32>
    %149 = vector.broadcast %1 : f32 to vector<8x8xf32>
    %150 = arith.mulf %148, %149 : vector<8x8xf32>
    %151 = vector.extract_strided_slice %7 {offsets = [8, 56], sizes = [8, 8], strides = [1, 1]} : vector<16x96xf32> to vector<8x8xf32>
    %152 = vector.extract_strided_slice %7 {offsets = [8, 88], sizes = [8, 8], strides = [1, 1]} : vector<16x96xf32> to vector<8x8xf32>
    %cst_71 = arith.constant dense<0.000000e+00> : vector<8x8xf32>
    %153 = tpu.matmul %150, %151, %cst_71 {dimension_numbers = #tpu.dot_dimension_numbers<[1], [1], [0], [0], [0, 0, 1, 0], [], []>} : vector<8x8xf32>, vector<8x8xf32>, vector<8x8xf32> -> vector<8x8xf32>
    %c1_72 = arith.constant 1 : index
    %c3_73 = arith.constant 3 : index
    %c0_74 = arith.constant 0 : index
    %c0_75 = arith.constant 0 : index
    %154 = vector.load %arg1[%c1_72, %c3_73, %c0_74, %c0_75] : memref<2x4x8x8xf32, #tpu.memory_space<vmem>>, vector<1x1x8x8xf32>
    %155 = vector.shape_cast %154 : vector<1x1x8x8xf32> to vector<8x8xf32>
    %156 = arith.addf %153, %155 : vector<8x8xf32>
    %cst_76 = arith.constant dense<0xFF800000> : vector<8xf32>
    %157 = vector.multi_reduction <maximumf>, %156, %cst_76 [1] : vector<8x8xf32> to vector<8xf32>
    %158 = vector.shape_cast %157 : vector<8xf32> to vector<8x1xf32>
    %159 = vector.broadcast %158 : vector<8x1xf32> to vector<8x8xf32>
    %160 = arith.subf %156, %159 : vector<8x8xf32>
    %161 = math.exp %160 : vector<8x8xf32>
    %cst_77 = arith.constant dense<0.000000e+00> : vector<8xf32>
    %162 = vector.multi_reduction <add>, %161, %cst_77 [1] : vector<8x8xf32> to vector<8xf32>
    %163 = vector.shape_cast %162 : vector<8xf32> to vector<8x1xf32>
    %cst_78 = arith.constant dense<0.000000e+00> : vector<8x8xf32>
    %164 = tpu.matmul %161, %152, %cst_78 {dimension_numbers = #tpu.dot_dimension_numbers<[1], [0], [0], [1], [0, 0, 1, 1], [], []>} : vector<8x8xf32>, vector<8x8xf32>, vector<8x8xf32> -> vector<8x8xf32>
    %165 = vector.broadcast %163 : vector<8x1xf32> to vector<8x8xf32>
    %166 = arith.divf %164, %165 : vector<8x8xf32>
    %c8_79 = arith.constant 8 : index
    %c24_80 = arith.constant 24 : index
    %167 = vector.load %arg7[%c8_79, %c24_80] : memref<16x32xf32, #tpu.memory_space<vmem>>, vector<8x8xf32>
    tpu.vector_store %arg7[%c8_79, %c24_80], %166 {strides = array<i32>} : memref<16x32xf32, #tpu.memory_space<vmem>>, vector<8x8xf32>,
    %c0_81 = arith.constant 0 : index
    %c0_82 = arith.constant 0 : index
    %168 = vector.load %arg7[%c0_81, %c0_82] : memref<16x32xf32, #tpu.memory_space<vmem>>, vector<16x32xf32>
    %c0_83 = arith.constant 0 : index
    %c0_84 = arith.constant 0 : index
    %169 = vector.load %arg4[%c0_83, %c0_84] : memref<32x32xf32, #tpu.memory_space<vmem>>, vector<32x32xf32>
    %cst_85 = arith.constant dense<0.000000e+00> : vector<16x32xf32>
    %170 = tpu.matmul %168, %169, %cst_85 {dimension_numbers = #tpu.dot_dimension_numbers<[1], [0], [0], [1], [0, 0, 1, 1], [], []>} : vector<16x32xf32>, vector<32x32xf32>, vector<16x32xf32> -> vector<16x32xf32>
    %c0_86 = arith.constant 0 : index
    %c0_87 = arith.constant 0 : index
    %171 = vector.load %arg5[%c0_86, %c0_87] : memref<1x32xf32, #tpu.memory_space<vmem>>, vector<1x32xf32>
    %172 = vector.broadcast %171 : vector<1x32xf32> to vector<16x32xf32>
    %173 = arith.addf %170, %172 : vector<16x32xf32>
    %c0_88 = arith.constant 0 : index
    %c0_89 = arith.constant 0 : index
    %174 = vector.load %arg6[%c0_88, %c0_89] : memref<16x32xf32, #tpu.memory_space<vmem>>, vector<16x32xf32>
    tpu.vector_store %arg6[%c0_88, %c0_89], %173 {strides = array<i32>} : memref<16x32xf32, #tpu.memory_space<vmem>>, vector<16x32xf32>,
    return
  }
}

</mosaic_0001>

<bundles_post_ra>
// kernel: tpu_custom_call.1
= control target key start
LH: loop header
LB: loop body
LE: loop exit
PB: predicated region body
PF: predicated region fallthrough
CT: control target
= control target key end

     0   :  { %11 = vsyncpa [#allocation4], 0  ;;  %s1308_s0 = inlined_call_operand.hbm [shape: f32[16,32], index: 0, kind: input, shape index: {}]   ;;  %s1309_s1 = inlined_call_operand.hbm [shape: f32[2,4,8,8], index: 1, kind: input, shape index: {}]   ;;  %s1310_s2 = inlined_call_operand.hbm [shape: f32[32,96], index: 2, kind: input, shape index: {}]   ;;  %s1311_s3 = inlined_call_operand.vmem [shape: f32[1,96], index: 3, kind: input, shape index: {}]   ;;  %s1312_s4 = inlined_call_operand.hbm [shape: f32[32,32], index: 4, kind: input, shape index: {}]   ;;  %s1313_s5 = inlined_call_operand.vmem [shape: f32[1,32], index: 5, kind: input, shape index: {}]   ;;  %s1314_s6 = inlined_call_operand.hbm [shape: f32[16,32], index: 6, kind: output, shape index: {}]  }
   0x1   :  { %12 = vsyncpa [#allocation7], 0 }
   0x2   :  { %13 = vsyncpa [#allocation10], 0 }
   0x3   :  { %14 = vsyncpa [#allocation5], 0  ;;  %s32_s23 = sshll.u32 %s1309_s1, 4  ;;  %s1076_s24 = smov [#allocation6]   ;;  %s33_s23 = int_to_ptr.hbm [resolvable:$true] %s32_s23 }
   0x4   :  { %s34_s25 = sshll.u32 %s1076_s24, 4  ;;  %s19_s28 = sshll.u32 %s1308_s0, 4  ;;  %s35_s25 = int_to_ptr.vmem [resolvable:$true] %s34_s25  ;;  %s20_s28 = int_to_ptr.hbm [resolvable:$true] %s19_s28 }
   0x5   :  { %s1077_s29 = smov 128   ;;  %s1078_s30 = smov 8  }
   0x6   :  { %40 = dma.hbm_to_vmem [thread:$0]  %s33_s23, 1024, %s35_s25, [#allocation7], %s1077_s29, %s1077_s29, %s1078_s30  }
   0x7   :  { %s1079_s7 = smov [#allocation3]   ;;  %s45_s1 = sshll.u32 %s1310_s2, 4  ;;  %s46_s1 = int_to_ptr.hbm [resolvable:$true] %s45_s1 }
   0x8   :  { %s21_s8 = sshll.u32 %s1079_s7, 4  ;;  %s60_s12 = sshll.u32 %s1312_s4, 4  ;;  %s22_s8 = int_to_ptr.vmem [resolvable:$true] %s21_s8  ;;  %s61_s12 = int_to_ptr.hbm [resolvable:$true] %s60_s12 }
   0x9   :  { %27 = dma.hbm_to_vmem [thread:$0]  %s20_s28, 256, %s22_s8, [#allocation4], %s1077_s29, %s1077_s29, %s1078_s30  }
   0xa   :  { %s1080_s13 = smov [#allocation8]   ;;  %s1081_s15 = smov [#allocation9]  }
   0xb   :  { %s47_s14 = sshll.u32 %s1080_s13, 4  ;;  %s62_s2 = sshll.u32 %s1081_s15, 4  ;;  %s48_s14 = int_to_ptr.vmem [resolvable:$true] %s47_s14  ;;  %s63_s2 = int_to_ptr.vmem [resolvable:$true] %s62_s2 }
   0xc   :  { %53 = dma.hbm_to_vmem [thread:$0]  %s46_s1, 512, %s48_s14, [#allocation7], %s1077_s29, %s1077_s29, %s1078_s30  }
   0xd   :  { %68 = dma.hbm_to_vmem [thread:$0]  %s61_s12, 512, %s63_s2, [#allocation10], %s1077_s29, %s1077_s29, %s1078_s30  }
   0xe   :  { %1068 = dma.done.wait [#allocation4], 256  }
   0xf   :  { %1069 = vsyncadd [#allocation4], 4294967040 }
  0x10   :  { %1070 = dma.done.wait [#allocation7], 1536  }
  0x11   :  { %1071 = vsyncadd [#allocation7], 4294965760 }
  0x12   :  { %1072 = dma.done.wait [#allocation10], 512  }
  0x13   :  { %1073 = vsyncadd [#allocation10], 4294966784  ;;  %v92_v0 = vld [vmem:[#allocation8 + $0x18] sm:$0xff]  ;;  %v91_v1 = vld [vmem:[#allocation8 + $0x10] sm:$0xff]  ;;  %vm97_vm0 = vcmask 261120   ;;  %s1082_s17 = smov 96  }
  0x14   :  { %116 = vmatpush.msra.mxu0 %v92_v0  ;;  %v90_v2 = vld [vmem:[#allocation8 + $0x8] sm:$0xff]  ;;  %v89_v3 = vld [vmem:[#allocation8] sm:$0xff]  ;;  %v87_v4 = vld [vmem:[#allocation3] sm:$0xff]  ;;  %s1083_s18 = smov 112   ;;  %s1084_s19 = smov 120   ;;  %vm132_vm1 = vcmask 64512  }
  0x15   :  { %v914_v5 = vld [vmem:[%s1311_s3] ss:$0 sm:$0xff]  ;;  %v88_v6 = vld [vmem:[#allocation3 + $0x8] sm:$0xff]  ;;  %s1085_s20 = smov 88   ;;  %s1086_s3 = smov 56   ;;  %v210_v25 = vld [vmem:[#allocation6 + $0x8] sm:$0xff] }
  0x16   :  { %117 = vmatpush.msra.mxu0 %v91_v1  ;;  %s1087_s21 = smov 80   ;;  %s1088_s22 = smov 72   ;;  %v128_v21 = vld [vmem:[#allocation6] sm:$0xff]  ;;  %v296_v28 = vld [vmem:[#allocation6 + $0x10] sm:$0xff]  ;;  %v382_v59 = vld [vmem:[#allocation6 + $0x18] sm:$0xff] }
  0x17   :  { %s1089_s23 = smov 104   ;;  %s1090_s24 = smov 64   ;;  %v469_v61 = vld [vmem:[#allocation6 + $0x20] sm:$0xff] }
  0x18   :  { %118 = vmatpush.msra.mxu0 %v90_v2  ;;  %s1091_s25 = smov 48   ;;  %s1092_s26 = smov 40  }
  0x19   :  { %s1093_s27 = smov 16   ;;  %s1094_s28 = smov 24  }
  0x1a   :  { %119 = vmatpush.msra.mxu0 %v89_v3  ;;  %v550_v3 = vld [vmem:[#allocation6 + $0x28] sm:$0xff]  ;;  %s1095_s9 = smov [#allocation11]   ;;  %s851_s11 = sshll.u32 %s1314_s6, 4  ;;  %s852_s11 = int_to_ptr.hbm [resolvable:$true] %s851_s11 }
  0x1b   :  { %866 = vmatmul.msk.f32.vlgmr.msra.gmra.mxu0 %vm97_vm0, %v87_v4  ;;  %s849_s10 = sshll.u32 %s1095_s9, 4  ;;  %s850_s10 = int_to_ptr.vmem [resolvable:$true] %s849_s10 }
  0x23   :  { %867 = vmatmul.msk.f32.gmra.mxu0 %vm97_vm0, %v88_v6 }
  0x98   :  { %v121_v7 = vpop.f32.mrf.mxu0 }
  0x99   :  { %v1160_v8 = vadd.f32 %v914_v5, %v121_v7 }
  0x9b   :  { %130 = vrot.lane.b32.xlu0 %v1160_v8, %s1082_s17  ;;  %v127_v9 = vmul.f32 0.35355338, %v1160_v8 }
  0x9d   :  { %297 = vrot.lane.b32.xlu2 %v127_v9, %s1083_s18  ;;  %211 = vrot.lane.b32.xlu1 %v127_v9, %s1084_s19 }
  0xa0   :  { %v124_v12 = vpop.f32.mrf.mxu0 }
  0xa1   :  { %v1181_v13 = vadd.f32 %v914_v5, %v124_v12  ;;  %v635_v5 = vld [vmem:[#allocation6 + $0x30] sm:$0xff] }
  0xa3   :  { %213 = vrot.lane.b32.xlu0 %v1160_v8, %s1085_s20  ;;  %v467_v17 = vmul.f32 0.35355338, %v1181_v13 }
  0xa5   :  { %248 = vrot.lane.b32.xlu2 %v1160_v8, %s1086_s3  ;;  %299 = vrot.lane.b32.xlu1 %v1160_v8, %s1087_s21 }
  0xab   :  { %385 = vrot.lane.b32.xlu0 %v1160_v8, %s1088_s22 }
  0xad   :  { %383 = vrot.lane.b32.xlu2 %v127_v9, %s1089_s23  ;;  %167 = vrot.lane.b32.xlu1 %v1160_v8, %s1090_s24 }
  0xb3   :  { %471 = vrot.lane.b32.xlu0 %v1181_v13, %s1082_s17 }
  0xb5   :  { %334 = vrot.lane.b32.xlu1 %v1160_v8, %s1091_s25  ;;  %553 = vrot.lane.b32.xlu2 %v1181_v13, %s1085_s20 }
  0xbb   :  { %551 = vrot.lane.b32.xlu0 %v467_v17, %s1084_s19 }
  0xf7   :  { %v298_v15 = vpop.permute.xlu2 %297 }
  0xff   :  { %v249_v19 = vpop.permute.xlu2 %248 }
 0x107   :  { %v384_v35 = vpop.permute.xlu2 %383 }
 0x10d   :  { %v131_v10 = vpop.permute.xlu0 %130 }
 0x10e   :  { %868 = vmatpush.xpose.msk.msra.mxu1 %vm132_vm1, %v131_v10 }
 0x10f   :  { %v212_v11 = vpop.permute.xlu1 %211  ;;  %v554_v36 = vpop.permute.xlu2 %553 }
 0x111   :  { %869 = vmatmul.msk.f32.vlgmr.msra.gmra.mxu1 %vm132_vm1, %v127_v9 }
 0x115   :  { %v214_v14 = vpop.permute.xlu0 %213 }
 0x116   :  { %871 = vmatpush.xpose.msk.msrb.mxu0 %vm132_vm1, %v214_v14 }
 0x117   :  { %v300_v16 = vpop.permute.xlu1 %299 }
 0x118   :  { %874 = vmatpush.xpose.msk.msrb.mxu1 %vm132_vm1, %v300_v16 }
 0x119   :  { %872 = vmatmul.msk.f32.vlgmr.msrb.gmra.mxu0 %vm132_vm1, %v212_v11  ;;  %v720_v11 = vld [vmem:[#allocation6 + $0x38] sm:$0xff] }
 0x11b   :  { %875 = vmatmul.msk.f32.vlgmr.msrb.gmra.mxu1 %vm132_vm1, %v298_v15 }
 0x11d   :  { %v386_v26 = vpop.permute.xlu0 %385 }
 0x11f   :  { %v168_v18 = vpop.permute.xlu1 %167 }
 0x120   :  { %188 = vmatpush.msra.mxu2 %v168_v18 }
 0x122   :  { %269 = vmatpush.msrb.mxu2 %v249_v19 }
 0x125   :  { %v472_v34 = vpop.permute.xlu0 %471 }
 0x127   :  { %v335_v20 = vpop.permute.xlu1 %334 }
 0x128   :  { %355 = vmatpush.msra.mxu3 %v335_v20 }
 0x12a   :  { %880 = vmatpush.xpose.msk.msrb.mxu3 %vm132_vm1, %v472_v34 }
 0x12d   :  { %v552_v37 = vpop.permute.xlu0 %551 }
 0x18e   :  { %v155_v22 = vpop.f32.mrf.mxu1 }
 0x18f   :  { %v156_v23 = vadd.f32 %v155_v22, %v128_v21 }
 0x191   :  { %v158_v24 = vsel %vm132_vm1, %v156_v23, -inf }
 0x192   :  { %159 = vmax.xlane.f32.xlu2 %v158_v24 }
 0x196   :  { %v236_v27 = vpop.f32.mrf.mxu0 }
 0x197   :  { %v237_v29 = vadd.f32 %v236_v27, %v210_v25 }
 0x198   :  { %v322_v30 = vpop.f32.mrf.mxu1 }
 0x199   :  { %v323_v31 = vadd.f32 %v322_v30, %v296_v28  ;;  %v239_v32 = vsel %vm132_vm1, %v237_v29, -inf }
 0x19a   :  { %240 = vmax.xlane.f32.xlu0 %v239_v32 }
 0x19b   :  { %v325_v33 = vsel %vm132_vm1, %v323_v31, -inf }
 0x19c   :  { %326 = vmax.xlane.f32.xlu1 %v325_v33 }
 0x1aa   :  { %638 = vrot.lane.b32.xlu2 %v1181_v13, %s1087_s21 }
 0x1ae   :  { %636 = vrot.lane.b32.xlu0 %v467_v17, %s1083_s18 }
 0x1b2   :  { %721 = vrot.lane.b32.xlu2 %v467_v17, %s1089_s23 }
 0x1b5   :  { %723 = vrot.lane.b32.xlu1 %v1181_v13, %s1088_s22 }
 0x1b6   :  { %507 = vrot.lane.b32.xlu0 %v1181_v13, %s1090_s24 }
 0x1bd   :  { %420 = vrot.lane.b32.xlu1 %v1160_v8, %s1092_s26 }
 0x205   :  { %v160_v38 = vpop.xlane.xlu2 %159 }
 0x206   :  { %v161_v39 = vsub.f32 %v156_v23, %v160_v38 }
 0x208   :  { %v162_v40 = vmul.f32 1.442695, %v161_v39 }
 0x20a   :  { %916 = vpow2.f32 %v162_v40 }
 0x20d   :  { %v241_v41 = vpop.xlane.xlu0 %240  ;;  %v639_v50 = vpop.permute.xlu2 %638 }
 0x20e   :  { %v242_v42 = vsub.f32 %v237_v29, %v241_v41 }
 0x20f   :  { %v327_v43 = vpop.xlane.xlu1 %326 }
 0x210   :  { %v1206_v44 = vpop.eup %916  ;;  %v243_v45 = vmul.f32 1.442695, %v242_v42  ;;  %v328_v46 = vsub.f32 %v323_v31, %v327_v43 }
 0x211   :  { %870 = vmatmul.msk.f32.vlgmr.msra.gmra.mxu2 %vm132_vm1, %v1206_v44  ;;  %v164_v42 = vsel %vm132_vm1, %v1206_v44, 0.0 }
 0x212   :  { %918 = vpow2.f32 %v243_v45  ;;  %v329_v47 = vmul.f32 1.442695, %v328_v46  ;;  %877 = vmatpush.xpose.msk.msra.mxu2 %vm132_vm1, %v386_v26 }
 0x214   :  { %920 = vpow2.f32 %v329_v47 }
 0x215   :  { %v722_v55 = vpop.permute.xlu2 %721 }
 0x218   :  { %v919_v48 = vpop.eup %918 }
 0x219   :  { %873 = vmatmul.msk.f32.vlgmr.msrb.gmra.mxu2 %vm132_vm1, %v919_v48  ;;  %v245_v16 = vsel %vm132_vm1, %v919_v48, 0.0 }
 0x21a   :  { %v921_v49 = vpop.eup %920  ;;  %883 = vmatpush.xpose.msk.msrb.mxu2 %vm132_vm1, %v554_v36 }
 0x21b   :  { %876 = vmatmul.msk.f32.vlgmr.msra.gmra.mxu3 %vm132_vm1, %v921_v49 }
 0x21c   :  { %886 = vmatpush.xpose.msk.msra.mxu3 %vm132_vm1, %v639_v50 }
 0x220   :  { %v637_v51 = vpop.permute.xlu0 %636 }
 0x221   :  { %878 = vmatmul.msk.f32.vlgmr.msra.gmra.mxu2 %vm132_vm1, %v384_v35 }
 0x223   :  { %881 = vmatmul.msk.f32.vlgmr.msrb.gmra.mxu3 %vm132_vm1, %v467_v17  ;;  %v331_v17 = vsel %vm132_vm1, %v921_v49, 0.0 }
 0x227   :  { %v724_v52 = vpop.permute.xlu1 %723 }
 0x228   :  { %v508_v53 = vpop.permute.xlu0 %507  ;;  %889 = vmatpush.xpose.msk.msra.mxu2 %vm132_vm1, %v724_v52 }
 0x229   :  { %528 = vmatpush.msra.mxu0 %v508_v53  ;;  %884 = vmatmul.msk.f32.vlgmr.msrb.gmra.mxu2 %vm132_vm1, %v552_v37 }
 0x22b   :  { %887 = vmatmul.msk.f32.vlgmr.msra.gmra.mxu3 %vm132_vm1, %v637_v51 }
 0x22f   :  { %v421_v54 = vpop.permute.xlu1 %420 }
 0x230   :  { %441 = vmatpush.msra.mxu1 %v421_v54 }
 0x231   :  { %890 = vmatmul.msk.f32.vlgmr.msra.gmra.mxu2 %vm132_vm1, %v722_v55 }
 0x294   :  { %v1221_v56 = vpop.f32.mrf.mxu2 }
 0x29c   :  { %v1223_v57 = vpop.f32.mrf.mxu2 }
 0x29e   :  { %v1225_v58 = vpop.f32.mrf.mxu3 }
 0x2a4   :  { %v408_v60 = vpop.f32.mrf.mxu2 }
 0x2a5   :  { %v409_v62 = vadd.f32 %v408_v60, %v382_v59 }
 0x2a6   :  { %v495_v63 = vpop.f32.mrf.mxu3 }
 0x2a7   :  { %v496_v0 = vadd.f32 %v495_v63, %v469_v61  ;;  %v411_v1 = vsel %vm132_vm1, %v409_v62, -inf }
 0x2a8   :  { %412 = vmax.xlane.f32.xlu1 %v411_v1 }
 0x2a9   :  { %v498_v2 = vsel %vm132_vm1, %v496_v0, -inf }
 0x2aa   :  { %499 = vmax.xlane.f32.xlu0 %v498_v2 }
 0x2ac   :  { %v576_v4 = vpop.f32.mrf.mxu2 }
 0x2ad   :  { %v577_v6 = vadd.f32 %v576_v4, %v550_v3 }
 0x2ae   :  { %v661_v7 = vpop.f32.mrf.mxu3 }
 0x2af   :  { %v662_v8 = vadd.f32 %v661_v7, %v635_v5  ;;  %v579_v9 = vsel %vm132_vm1, %v577_v6, -inf }
 0x2b0   :  { %580 = vmax.xlane.f32.xlu2 %v579_v9 }
 0x2b1   :  { %v664_v10 = vsel %vm132_vm1, %v662_v8, -inf }
 0x2b2   :  { %665 = vmax.xlane.f32.xlu0 %v664_v10 }
 0x2b4   :  { %v746_v12 = vpop.f32.mrf.mxu2 }
 0x2b5   :  { %v747_v14 = vadd.f32 %v746_v12, %v720_v11 }
 0x2b7   :  { %v749_v15 = vsel %vm132_vm1, %v747_v14, -inf }
 0x2b8   :  { %750 = vmax.xlane.f32.xlu2 %v749_v15 }
 0x2c1   :  { %673 = vrot.lane.b32.xlu1 %v1181_v13, %s1091_s25 }
 0x2c6   :  { %758 = vrot.lane.b32.xlu0 %v1181_v13, %s1092_s26 }
 0x2d0   :  { %588 = vrot.lane.b32.xlu2 %v1181_v13, %s1086_s3 }
 0x2eb   :  { %246 = vadd.xlane.f32.xlu1 %v245_v16 }
 0x2f9   :  { %332 = vadd.xlane.f32.xlu2 %v331_v17 }
 0x31b   :  { %v413_v18 = vpop.xlane.xlu1 %412 }
 0x31c   :  { %v414_v19 = vsub.f32 %v409_v62, %v413_v18 }
 0x31d   :  { %v500_v20 = vpop.xlane.xlu0 %499 }
 0x31e   :  { %v415_v21 = vmul.f32 1.442695, %v414_v19  ;;  %v501_v22 = vsub.f32 %v496_v0, %v500_v20 }
 0x320   :  { %922 = vpow2.f32 %v415_v21  ;;  %v502_v23 = vmul.f32 1.442695, %v501_v22 }
 0x322   :  { %924 = vpow2.f32 %v502_v23 }
 0x323   :  { %v581_v24 = vpop.xlane.xlu2 %580 }
 0x324   :  { %v582_v25 = vsub.f32 %v577_v6, %v581_v24 }
 0x325   :  { %v666_v26 = vpop.xlane.xlu0 %665 }
 0x326   :  { %v923_v27 = vpop.eup %922  ;;  %v583_v28 = vmul.f32 1.442695, %v582_v25  ;;  %v667_v13 = vsub.f32 %v662_v8, %v666_v26 }
 0x327   :  { %879 = vmatmul.msk.f32.vlgmr.msra.gmra.mxu1 %vm132_vm1, %v923_v27  ;;  %v417_v29 = vsel %vm132_vm1, %v923_v27, 0.0 }
 0x328   :  { %v925_v30 = vpop.eup %924  ;;  %926 = vpow2.f32 %v583_v28  ;;  %v668_v31 = vmul.f32 1.442695, %v667_v13  ;;  %418 = vadd.xlane.f32.xlu0 %v417_v29 }
 0x329   :  { %882 = vmatmul.msk.f32.vlgmr.msra.gmra.mxu0 %vm132_vm1, %v925_v30  ;;  %v504_v46 = vsel %vm132_vm1, %v925_v30, 0.0 }
 0x32a   :  { %928 = vpow2.f32 %v668_v31 }
 0x32b   :  { %v751_v32 = vpop.xlane.xlu2 %750 }
 0x32c   :  { %v752_v33 = vsub.f32 %v747_v14, %v751_v32 }
 0x32e   :  { %v927_v34 = vpop.eup %926  ;;  %v753_v35 = vmul.f32 1.442695, %v752_v33 }
 0x32f   :  { %v585_v36 = vsel %vm132_vm1, %v927_v34, 0.0 }
 0x330   :  { %v929_v37 = vpop.eup %928  ;;  %930 = vpow2.f32 %v753_v35  ;;  %586 = vadd.xlane.f32.xlu1 %v585_v36 }
 0x331   :  { %v670_v38 = vsel %vm132_vm1, %v929_v37, 0.0 }
 0x332   :  { %671 = vadd.xlane.f32.xlu2 %v670_v38 }
 0x333   :  { %v674_v39 = vpop.permute.xlu1 %673  ;;  %v589_v40 = vpop.permute.xlu2 %588 }
 0x334   :  { %609 = vmatpush.msrb.mxu1 %v589_v40  ;;  %694 = vmatpush.msrb.mxu0 %v674_v39 }
 0x335   :  { %885 = vmatmul.msk.f32.vlgmr.msrb.gmra.mxu1 %vm132_vm1, %v927_v34  ;;  %888 = vmatmul.msk.f32.vlgmr.msrb.gmra.mxu0 %vm132_vm1, %v929_v37 }
 0x336   :  { %v931_v41 = vpop.eup %930 }
 0x337   :  { %v755_v43 = vsel %vm132_vm1, %v931_v41, 0.0 }
 0x338   :  { %v759_v45 = vpop.permute.xlu0 %758  ;;  %165 = vadd.xlane.f32.xlu1 %v164_v42  ;;  %756 = vadd.xlane.f32.xlu0 %v755_v43 }
 0x339   :  { %779 = vmatpush.msra.mxu1 %v759_v45 }
 0x33a   :  { %505 = vadd.xlane.f32.xlu2 %v504_v46 }
 0x33d   :  { %891 = vmatmul.msk.f32.vlgmr.msra.gmra.mxu1 %vm132_vm1, %v931_v41 }
 0x35e   :  { %v247_v47 = vpop.xlane.xlu1 %246 }
 0x35f   :  { %932 = vrcp.f32 %v247_v47  ;;  %v285_v51 = vand.u32 2147483648, %v247_v47  ;;  %v283_v44 = vand.u32 2147483647, %v247_v47  ;;  %vm279_vm3 = vweird.f32 %v247_v47 }
 0x361   :  { %v286_v55 = vor.u32 1.1754944e-38, %v285_v51  ;;  %vm284_vm5 = vcmp.eq.f32.partialorder %v283_v44, 8.507059e+37 }
 0x365   :  { %v933_v48 = vpop.eup %932 }
 0x366   :  { %v275_v49 = vmul.f32 %v933_v48, %v247_v47  ;;  %vm280_vm2 = vweird.f32 %v933_v48 }
 0x367   :  { %vm281_vm4 = vmor %vm279_vm3, %vm280_vm2 }
 0x368   :  { %v276_v50 = vsub.f32 1.0, %v275_v49 }
 0x36a   :  { %v277_v52 = vmul.f32 %v933_v48, %v276_v50 }
 0x36c   :  { %v333_v53 = vpop.xlane.xlu2 %332  ;;  %v278_v54 = vadd.f32 %v933_v48, %v277_v52 }
 0x36d   :  { %934 = vrcp.f32 %v333_v53  ;;  %v371_v1 = vand.u32 2147483648, %v333_v53  ;;  %v369_v3 = vand.u32 2147483647, %v333_v53  ;;  %vm365_vm7 = vweird.f32 %v333_v53 }
 0x36e   :  { %v282_v59 = vsel %vm281_vm4, %v933_v48, %v278_v54 }
 0x36f   :  { %v287_v60 = vsel %vm284_vm5, %v286_v55, %v282_v59  ;;  %v372_v5 = vor.u32 1.1754944e-38, %v371_v1  ;;  %vm370_vm9 = vcmp.eq.f32.partialorder %v369_v3, 8.507059e+37 }
 0x370   :  { %v288_v61 = vmul.f32 %v287_v60, %v1223_v57 }
 0x372   :  { %290 = vrot.lane.b32.xlu0 %v288_v61, %s1078_s30 }
 0x373   :  { %v935_v62 = vpop.eup %934 }
 0x374   :  { %v361_v63 = vmul.f32 %v935_v62, %v333_v53  ;;  %vm366_vm6 = vweird.f32 %v935_v62 }
 0x375   :  { %vm367_vm8 = vmor %vm365_vm7, %vm366_vm6 }
 0x376   :  { %v362_v0 = vsub.f32 1.0, %v361_v63 }
 0x378   :  { %v363_v2 = vmul.f32 %v935_v62, %v362_v0 }
 0x37a   :  { %v364_v4 = vadd.f32 %v935_v62, %v363_v2 }
 0x37c   :  { %v368_v6 = vsel %vm367_vm8, %v935_v62, %v364_v4 }
 0x37d   :  { %v373_v7 = vsel %vm370_vm9, %v372_v5, %v368_v6 }
 0x37e   :  { %v374_v8 = vmul.f32 %v373_v7, %v1225_v58 }
 0x380   :  { %376 = vrot.lane.b32.xlu1 %v374_v8, %s1093_s27 }
 0x39b   :  { %v419_v57 = vpop.xlane.xlu0 %418 }
 0x39c   :  { %936 = vrcp.f32 %v419_v57  ;;  %v457_v15 = vand.u32 2147483648, %v419_v57  ;;  %v455_v17 = vand.u32 2147483647, %v419_v57  ;;  %vm451_vm11 = vweird.f32 %v419_v57 }
 0x39e   :  { %v458_v58 = vor.u32 1.1754944e-38, %v457_v15  ;;  %vm456_vm13 = vcmp.eq.f32.partialorder %v455_v17, 8.507059e+37 }
 0x3a2   :  { %v937_v9 = vpop.eup %936 }
 0x3a3   :  { %v447_v10 = vmul.f32 %v937_v9, %v419_v57  ;;  %v587_v11 = vpop.xlane.xlu1 %586  ;;  %vm452_vm10 = vweird.f32 %v937_v9 }
 0x3a4   :  { %938 = vrcp.f32 %v587_v11  ;;  %vm453_vm12 = vmor %vm451_vm11, %vm452_vm10  ;;  %v443_v25 = vpop.f32.mrf.mxu1  ;;  %v623_v31 = vand.u32 2147483647, %v587_v11  ;;  %v625_v33 = vand.u32 2147483648, %v587_v11  ;;  %vm619_vm2 = vweird.f32 %v587_v11 }
 0x3a5   :  { %v448_v12 = vsub.f32 1.0, %v447_v10  ;;  %v672_v14 = vpop.xlane.xlu2 %671 }
 0x3a6   :  { %940 = vrcp.f32 %v672_v14  ;;  %v1263_v30 = vpop.f32.mrf.mxu0  ;;  %v708_v35 = vand.u32 2147483647, %v672_v14  ;;  %v710_v36 = vand.u32 2147483648, %v672_v14  ;;  %vm1268_vm3 = vcmp.eq.f32.partialorder %v623_v31, 8.507059e+37 }
 0x3a7   :  { %v449_v16 = vmul.f32 %v937_v9, %v448_v12  ;;  %v626_v42 = vor.u32 1.1754944e-38, %v625_v33  ;;  %vm704_vm5 = vweird.f32 %v672_v14  ;;  %v915_v33 = vld [vmem:[%s1313_s5] ss:$0 sm:$0xff] }
 0x3a8   :  { %vm709_vm7 = vcmp.eq.f32.partialorder %v708_v35, 8.507059e+37  ;;  %v711_v49 = vor.u32 1.1754944e-38, %v710_v36 }
 0x3a9   :  { %v450_v18 = vadd.f32 %v937_v9, %v449_v16 }
 0x3aa   :  { %v939_v19 = vpop.eup %938 }
 0x3ab   :  { %v615_v20 = vmul.f32 %v939_v19, %v587_v11  ;;  %v454_v21 = vsel %vm453_vm12, %v937_v9, %v450_v18  ;;  %v1256_v22 = vpop.xlane.xlu1 %165  ;;  %v1258_v23 = vpop.xlane.xlu0 %756  ;;  %vm620_vm14 = vweird.f32 %v939_v19 }
 0x3ac   :  { %v941_v24 = vpop.eup %940  ;;  %v459_v26 = vsel %vm456_vm13, %v458_v58, %v454_v21  ;;  %942 = vrcp.f32 %v1256_v22  ;;  %vm621_vm4 = vmor %vm619_vm2, %vm620_vm14  ;;  %v202_v46 = vand.u32 2147483647, %v1256_v22  ;;  %v204_v54 = vand.u32 2147483648, %v1256_v22 }
 0x3ad   :  { %v616_v27 = vsub.f32 1.0, %v615_v20  ;;  %v460_v28 = vmul.f32 %v459_v26, %v443_v25  ;;  %v700_v13 = vmul.f32 %v941_v24, %v672_v14  ;;  %v1261_v29 = vpop.xlane.xlu2 %505  ;;  %944 = vrcp.f32 %v1258_v23  ;;  %v807_v25 = vld [vmem:[#allocation9 + $0x8] sm:$0xff]  ;;  %v806_v26 = vld [vmem:[#allocation9] sm:$0xff] }
 0x3ae   :  { %946 = vrcp.f32 %v1261_v29  ;;  %vm705_vm15 = vweird.f32 %v941_v24  ;;  %vm198_vm9 = vweird.f32 %v1256_v22  ;;  %v544_v2 = vand.u32 2147483648, %v1261_v29 }
 0x3af   :  { %v701_v32 = vsub.f32 1.0, %v700_v13  ;;  %462 = vrot.lane.b32.xlu2 %v460_v28, %s1094_s28  ;;  %v617_v34 = vmul.f32 %v939_v19, %v616_v27  ;;  %vm706_vm6 = vmor %vm704_vm5, %vm705_vm15  ;;  %v795_v3 = vand.u32 2147483648, %v1258_v23  ;;  %v793_v6 = vand.u32 2147483647, %v1258_v23 }
 0x3b0   :  { %v205_v7 = vor.u32 1.1754944e-38, %v204_v54  ;;  %v542_v57 = vand.u32 2147483647, %v1261_v29  ;;  %vm203_vm13 = vcmp.eq.f32.partialorder %v202_v46, 8.507059e+37  ;;  %vm789_vm14 = vweird.f32 %v1258_v23 }
 0x3b1   :  { %v702_v37 = vmul.f32 %v941_v24, %v701_v32  ;;  %v618_v39 = vadd.f32 %v939_v19, %v617_v34  ;;  %vm538_vm15 = vweird.f32 %v1261_v29  ;;  %v796_v14 = vor.u32 1.1754944e-38, %v795_v3 }
 0x3b2   :  { %v943_v38 = vpop.eup %942  ;;  %v611_v47 = vpop.f32.mrf.mxu1  ;;  %v545_v15 = vor.u32 1.1754944e-38, %v544_v2  ;;  %vm543_vm5 = vcmp.eq.f32.partialorder %v542_v57, 8.507059e+37 }
 0x3b3   :  { %v194_v41 = vmul.f32 %v943_v38, %v1256_v22  ;;  %v703_v43 = vadd.f32 %v941_v24, %v702_v37  ;;  %v945_v45 = vpop.eup %944  ;;  %v622_v48 = vsel %vm621_vm4, %v939_v19, %v618_v39  ;;  %v696_v60 = vpop.f32.mrf.mxu0  ;;  %vm199_vm8 = vweird.f32 %v943_v38 }
 0x3b4   :  { %v947_v50 = vpop.eup %946  ;;  %v785_v52 = vmul.f32 %v945_v45, %v1258_v23  ;;  %v627_v44 = vsel %vm1268_vm3, %v626_v42, %v622_v48  ;;  %vm790_vm10 = vweird.f32 %v945_v45  ;;  %vm200_vm11 = vmor %vm198_vm9, %vm199_vm8  ;;  %vm794_vm4 = vcmp.eq.f32.partialorder %v793_v6, 8.507059e+37 }
 0x3b5   :  { %v195_v51 = vsub.f32 1.0, %v194_v41  ;;  %v707_v53 = vsel %vm706_vm6, %v941_v24, %v703_v43  ;;  %v534_v55 = vmul.f32 %v947_v50, %v1261_v29  ;;  %v628_v59 = vmul.f32 %v627_v44, %v611_v47  ;;  %vm791_vm2 = vmor %vm789_vm14, %vm790_vm10  ;;  %v809_v24 = vld [vmem:[#allocation9 + $0x18] sm:$0xff] }
 0x3b6   :  { %v712_v61 = vsel %vm709_vm7, %v711_v49, %v707_v53  ;;  %v786_v63 = vsub.f32 1.0, %v785_v52  ;;  %vm539_vm12 = vweird.f32 %v947_v50  ;;  %vm293_vm6 = vcmask 130112   ;;  %832 = vmatpush.msrb.mxu3 %v809_v24 }
 0x3b7   :  { %v196_v62 = vmul.f32 %v943_v38, %v195_v51  ;;  %v713_v0 = vmul.f32 %v712_v61, %v696_v60  ;;  %v535_v1 = vsub.f32 1.0, %v534_v55  ;;  %630 = vrot.lane.b32.xlu0 %v628_v59, %s1078_s30  ;;  %vm540_vm3 = vmor %vm538_vm15, %vm539_vm12  ;;  %vm379_vm7 = vcmask 195712  }
 0x3b8   :  { %v787_v5 = vmul.f32 %v945_v45, %v786_v63  ;;  %vm465_vm8 = vcmask 261312  }
 0x3b9   :  { %v197_v4 = vadd.f32 %v943_v38, %v196_v62  ;;  %715 = vrot.lane.b32.xlu1 %v713_v0, %s1093_s27  ;;  %v536_v8 = vmul.f32 %v947_v50, %v535_v1 }
 0x3ba   :  { %v788_v10 = vadd.f32 %v945_v45, %v787_v5  ;;  %v781_v19 = vpop.f32.mrf.mxu1 }
 0x3bb   :  { %v201_v9 = vsel %vm200_vm11, %v943_v38, %v197_v4  ;;  %v537_v12 = vadd.f32 %v947_v50, %v536_v8 }
 0x3bc   :  { %v206_v11 = vsel %vm203_vm13, %v205_v7, %v201_v9  ;;  %v792_v16 = vsel %vm791_vm2, %v945_v45, %v788_v10 }
 0x3bd   :  { %v207_v17 = vmul.f32 %v206_v11, %v1221_v56  ;;  %v541_v18 = vsel %vm540_vm3, %v947_v50, %v537_v12  ;;  %v797_v58 = vsel %vm794_vm4, %v796_v14, %v792_v16  ;;  %v808_v56 = vld [vmem:[#allocation9 + $0x10] sm:$0xff] }
 0x3be   :  { %v546_v20 = vsel %vm543_vm5, %v545_v15, %v541_v18  ;;  %v798_v21 = vmul.f32 %v797_v58, %v781_v19  ;;  %833 = vmatpush.msrb.mxu3 %v808_v56 }
 0x3bf   :  { %208 = vst.msk [vmem:[#allocation2] sm:$0xff] %vm132_vm1, %v207_v17  ;;  %v547_v22 = vmul.f32 %v546_v20, %v1263_v30 }
 0x3c0   :  { %800 = vrot.lane.b32.xlu0 %v798_v21, %s1094_s28  ;;  %834 = vmatpush.msrb.mxu3 %v807_v25 }
 0x3c1   :  { %548 = vst.msk [vmem:[#allocation2 + $0x8] sm:$0xff] %vm132_vm1, %v547_v22 }
 0x3c2   :  { %835 = vmatpush.msrb.mxu3 %v806_v26 }
 0x3e4   :  { %v291_v23 = vpop.permute.xlu0 %290 }
 0x3e5   :  { %294 = vst.msk [vmem:[#allocation2] sm:$0xff] %vm293_vm6, %v291_v23 }
 0x3f2   :  { %v377_v27 = vpop.permute.xlu1 %376 }
 0x3f3   :  { %380 = vst.msk [vmem:[#allocation2] sm:$0xff] %vm379_vm7, %v377_v27 }
 0x409   :  { %v463_v28 = vpop.permute.xlu2 %462 }
 0x40a   :  { %466 = vst.msk [vmem:[#allocation2] sm:$0xff] %vm465_vm8, %v463_v28 }
 0x411   :  { %v804_v13 = vld [vmem:[#allocation2] sm:$0xff] }
 0x412   :  { %892 = vmatmul.msk.f32.vlgmr.msrb.gmra.mxu3 %vm97_vm0, %v804_v13 }
 0x429   :  { %v631_v29 = vpop.permute.xlu0 %630 }
 0x42a   :  { %633 = vst.msk [vmem:[#allocation2 + $0x8] sm:$0xff] %vm293_vm6, %v631_v29 }
 0x42b   :  { %v716_v30 = vpop.permute.xlu1 %715 }
 0x42c   :  { %718 = vst.msk [vmem:[#allocation2 + $0x8] sm:$0xff] %vm379_vm7, %v716_v30 }
 0x432   :  { %v801_v31 = vpop.permute.xlu0 %800 }
 0x433   :  { %803 = vst.msk [vmem:[#allocation2 + $0x8] sm:$0xff] %vm465_vm8, %v801_v31 }
 0x43a   :  { %v805_v32 = vld [vmem:[#allocation2 + $0x8] sm:$0xff] }
 0x43b   :  { %893 = vmatmul.msk.f32.gmra.mxu3 %vm97_vm0, %v805_v32 }
 0x495   :  { %v837_v34 = vpop.f32.mrf.mxu3 }
 0x496   :  { %v838_v35 = vadd.f32 %v915_v33, %v837_v34 }
 0x498   :  { %843 = vst.msk [vmem:[#allocation11] sm:$0xff] %vm97_vm0, %v838_v35 }
 0x4be   :  { %v840_v36 = vpop.f32.mrf.mxu3 }
 0x4bf   :  { %v841_v37 = vadd.f32 %v915_v33, %v840_v36 }
 0x4c1   :  { %844 = vst.msk [vmem:[#allocation11 + $0x8] sm:$0xff] %vm97_vm0, %v841_v37 }
 0x4c2   :  { %857 = dma.vmem_to_hbm [thread:$0]  %s850_s10, 256, %s852_s11, [#allocation5], %s1077_s29, %s1077_s29, %s1078_s30  }
 0x4c3   :  { %1074 = dma.done.wait [#allocation5], 256  }
 0x4c4   :  { %1075 = vsyncadd [#allocation5], 4294967040 }
 0x4c5   :  { %862 = vsyncpa [#allocation4], 1 }
 0x4c6   :  { %863 = vsyncpa [#allocation7], 1 }
 0x4c7   :  { %864 = vsyncpa [#allocation10], 1 }
 0x4c8   :  { %865 = vsyncpa [#allocation5], 1 }

</bundles_post_ra>
